<compile_context>
chip_gen: v5e
topology: v5e:2x2
jax: 0.10.0
libtpu: 0.0.40
codegen_flags: <defaults>
</compile_context>

<pallas_src>
import functools

import jax
import jax.numpy as jnp
from jax.experimental import pallas as pl
from jax.experimental.pallas import tpu as pltpu

IN_FEATURES = 256
HIDDEN = 64
NUM_CLASSES = 10
CLASS_PAD = 128                      # lane-dense output width
_MASK_VALUE = -1e30                  # "−inf" for masked logits (finite, exp→0)


def _round_up(n, m):
    return ((n + m - 1) // m) * m


def nn1hidden_kernel(x_ref, w1_ref, b1_ref, w2_ref, b2_ref, o_ref):
    # Layer 1: Linear(256 -> 64) + ReLU (MXU matmul, f32 accumulate)
    h1 = jnp.dot(x_ref[...], w1_ref[...], preferred_element_type=jnp.float32)
    h1 = jnp.maximum(h1 + b1_ref[...], 0.0)          # (TB, 64)

    # Layer 2: Linear(64 -> 128-padded classes); pad columns of W2/b2 are 0.
    h2 = jnp.dot(h1, w2_ref[...], preferred_element_type=jnp.float32)
    h2 = h2 + b2_ref[...]                            # (TB, 128)

    # Mask the 118 padded class lanes so they don't corrupt the logsumexp.
    lane = jax.lax.broadcasted_iota(jnp.int32, h2.shape, 1)
    h2 = jnp.where(lane < NUM_CLASSES, h2, _MASK_VALUE)

    # Numerically stable log-softmax over the class axis.
    m = jnp.max(h2, axis=1, keepdims=True)           # (TB, 1)
    z = h2 - m
    lse = jnp.log(jnp.sum(jnp.exp(z), axis=1, keepdims=True))
    o_ref[...] = (z - lse).astype(o_ref.dtype)       # (TB, 128) lane-dense store


@functools.partial(jax.jit, static_argnames=("tb",))
def nn1hidden_forward(x, w1, b1, w2, b2, *, tb=1024):
    """x: (B, 256) f32; w1: (256, 64); b1: (64,); w2: (64, 10); b2: (10,).

    Weights are stored as (in_features, out_features) == PyTorch weight.T,
    so the kernel computes plain x @ W (matches nn.Linear exactly).
    """
    B = x.shape[0]

    # Batch tile: multiple of 8 (f32 sublane), capped at `tb`.
    TB = min(tb, _round_up(B, 8))
    B_pad = _round_up(B, TB)

    # Pad batch so every grid step gets a full, aligned (TB, 256) block.
    x_p = jnp.pad(x, ((0, B_pad - B), (0, 0))) if B_pad != B else x

    # Lane-dense class dimension: pad W2 / b2 from 10 -> 128 with zeros.
    w2_p = jnp.pad(w2, ((0, 0), (0, CLASS_PAD - NUM_CLASSES)))
    b2_p = jnp.pad(b2.reshape(1, -1), ((0, 0), (0, CLASS_PAD - NUM_CLASSES)))
    b1_2d = b1.reshape(1, -1)

    grid = (B_pad // TB,)

    out_padded = pl.pallas_call(
        nn1hidden_kernel,
        out_shape=jax.ShapeDtypeStruct((B_pad, CLASS_PAD), jnp.float32),
        grid_spec=pltpu.PrefetchScalarGridSpec(
            num_scalar_prefetch=0,
            grid=grid,
            in_specs=[
                # x streams over the batch grid axis.
                pl.BlockSpec((TB, IN_FEATURES), lambda i: (i, 0)),
                # Weights / biases stay resident (constant block index).
                pl.BlockSpec((IN_FEATURES, HIDDEN), lambda i: (0, 0)),
                pl.BlockSpec((1, HIDDEN), lambda i: (0, 0)),
                pl.BlockSpec((HIDDEN, CLASS_PAD), lambda i: (0, 0)),
                pl.BlockSpec((1, CLASS_PAD), lambda i: (0, 0)),
            ],
            out_specs=pl.BlockSpec((TB, CLASS_PAD), lambda i: (i, 0)),
        ),
        compiler_params=pltpu.CompilerParams(
            # Batch tiles are independent -> megacore-parallel on v7x.
            dimension_semantics=("parallel",),
        ),
    )(x_p, w1, b1_2d, w2_p, b2_p)

    # Drop batch padding and the padded class lanes.
    return out_padded[:B, :NUM_CLASSES]


def init_params(key):
    """Deterministic init mimicking torch.nn.Linear's uniform(-1/sqrt(fan_in), ...)."""
    k1, k2, k3, k4 = jax.random.split(key, 4)
    bound1 = 1.0 / jnp.sqrt(256.0)
    bound2 = 1.0 / jnp.sqrt(64.0)
    # Stored as (in_features, out_features) == PyTorch weight.T
    w1 = jax.random.uniform(k1, (IN_FEATURES, HIDDEN), jnp.float32, -bound1, bound1)
    b1 = jax.random.uniform(k2, (HIDDEN,), jnp.float32, -bound1, bound1)
    w2 = jax.random.uniform(k3, (HIDDEN, NUM_CLASSES), jnp.float32, -bound2, bound2)
    b2 = jax.random.uniform(k4, (NUM_CLASSES,), jnp.float32, -bound2, bound2)
    return w1, b1, w2, b2


def reference_forward(x, w1, b1, w2, b2):
    h1 = jnp.maximum(x @ w1 + b1, 0.0)
    h2 = h1 @ w2 + b2
    return jax.nn.log_softmax(h2, axis=1)


if __name__ == "__main__":
    key = jax.random.PRNGKey(0)
    kx, kp = jax.random.split(key)

    B = 8
    x = jax.random.normal(kx, (B, IN_FEATURES), jnp.float32)
    w1, b1, w2, b2 = init_params(kp)

    y = nn1hidden_forward(x, w1, b1, w2, b2)
    jax.block_until_ready(y)

    y_ref = reference_forward(x, w1, b1, w2, b2)
    assert y.shape == (B, NUM_CLASSES)
    assert jnp.allclose(y, y_ref, atol=1e-5, rtol=1e-5)

    # Also exercise a batch that is not a multiple of the tile / sublane size
    # to validate the padding path.
    B2 = 13
    x2 = jax.random.normal(jax.random.PRNGKey(1), (B2, IN_FEATURES), jnp.float32)
    y2 = nn1hidden_forward(x2, w1, b1, w2, b2)
    jax.block_until_ready(y2)
    assert y2.shape == (B2, NUM_CLASSES)
    assert jnp.allclose(y2, reference_forward(x2, w1, b1, w2, b2),
                        atol=1e-5, rtol=1e-5)

    print("KERNEL_OK")
</pallas_src>

<mosaic_0001>
module attributes {stable_mosaic.version = 11 : i64} {
  func.func @nn1hidden_kernel(%arg0: i32, %arg1: memref<8x256xf32, #tpu.memory_space<vmem>>, %arg2: memref<256x64xf32, #tpu.memory_space<vmem>>, %arg3: memref<1x64xf32, #tpu.memory_space<vmem>>, %arg4: memref<64x128xf32, #tpu.memory_space<vmem>>, %arg5: memref<1x128xf32, #tpu.memory_space<vmem>>, %arg6: memref<8x128xf32, #tpu.memory_space<vmem>>) attributes {dimension_semantics = [#tpu.dimension_semantics<parallel>], iteration_bounds = array<i64: 1>, scalar_prefetch = 0 : i64, scratch_operands = 0 : i64, tpu.core_type = #tpu.core_type<tc>, window_params = [{transform_indices = @transform_0, window_bounds = array<i64: 8, 256>}, {pipeline_mode = #tpu.pipeline_mode<synchronous>, transform_indices = @transform_1, window_bounds = array<i64: 256, 64>}, {pipeline_mode = #tpu.pipeline_mode<synchronous>, transform_indices = @transform_2, window_bounds = array<i64: 1, 64>}, {pipeline_mode = #tpu.pipeline_mode<synchronous>, transform_indices = @transform_3, window_bounds = array<i64: 64, 128>}, {pipeline_mode = #tpu.pipeline_mode<synchronous>, transform_indices = @transform_4, window_bounds = array<i64: 1, 128>}, {transform_indices = @transform_5, window_bounds = array<i64: 8, 128>}]} {
    %c0 = arith.constant 0 : index
    %c0_0 = arith.constant 0 : index
    %0 = vector.load %arg1[%c0, %c0_0] : memref<8x256xf32, #tpu.memory_space<vmem>>, vector<8x256xf32>
    %c0_1 = arith.constant 0 : index
    %c0_2 = arith.constant 0 : index
    %1 = vector.load %arg2[%c0_1, %c0_2] : memref<256x64xf32, #tpu.memory_space<vmem>>, vector<256x64xf32>
    %cst = arith.constant dense<0.000000e+00> : vector<8x64xf32>
    %2 = tpu.matmul %0, %1, %cst {dimension_numbers = #tpu.dot_dimension_numbers<[1], [0], [0], [1], [0, 0, 1, 1], [], []>} : vector<8x256xf32>, vector<256x64xf32>, vector<8x64xf32> -> vector<8x64xf32>
    %c0_3 = arith.constant 0 : index
    %c0_4 = arith.constant 0 : index
    %3 = vector.load %arg3[%c0_3, %c0_4] : memref<1x64xf32, #tpu.memory_space<vmem>>, vector<1x64xf32>
    %4 = vector.broadcast %3 : vector<1x64xf32> to vector<8x64xf32>
    %5 = arith.addf %2, %4 : vector<8x64xf32>
    %cst_5 = arith.constant 0.000000e+00 : f32
    %6 = vector.broadcast %cst_5 : f32 to vector<8x64xf32>
    %7 = arith.maximumf %5, %6 : vector<8x64xf32>
    %c0_6 = arith.constant 0 : index
    %c0_7 = arith.constant 0 : index
    %8 = vector.load %arg4[%c0_6, %c0_7] : memref<64x128xf32, #tpu.memory_space<vmem>>, vector<64x128xf32>
    %cst_8 = arith.constant dense<0.000000e+00> : vector<8x128xf32>
    %9 = tpu.matmul %7, %8, %cst_8 {dimension_numbers = #tpu.dot_dimension_numbers<[1], [0], [0], [1], [0, 0, 1, 1], [], []>} : vector<8x64xf32>, vector<64x128xf32>, vector<8x128xf32> -> vector<8x128xf32>
    %c0_9 = arith.constant 0 : index
    %c0_10 = arith.constant 0 : index
    %10 = vector.load %arg5[%c0_9, %c0_10] : memref<1x128xf32, #tpu.memory_space<vmem>>, vector<1x128xf32>
    %11 = vector.broadcast %10 : vector<1x128xf32> to vector<8x128xf32>
    %12 = arith.addf %9, %11 : vector<8x128xf32>
    %13 = tpu.iota {dimensions = array<i32: 1>} : vector<8x128xi32>
    %c10_i32 = arith.constant 10 : i32
    %14 = vector.broadcast %c10_i32 : i32 to vector<8x128xi32>
    %15 = arith.cmpi slt, %13, %14 : vector<8x128xi32>
    %cst_11 = arith.constant -1.000000e+30 : f32
    %16 = vector.broadcast %cst_11 : f32 to vector<8x128xf32>
    %17 = arith.select %15, %12, %16 : vector<8x128xi1>, vector<8x128xf32>
    %cst_12 = arith.constant dense<0xFF800000> : vector<8xf32>
    %18 = vector.multi_reduction <maximumf>, %17, %cst_12 [1] : vector<8x128xf32> to vector<8xf32>
    %19 = vector.shape_cast %18 : vector<8xf32> to vector<8x1xf32>
    %20 = vector.broadcast %19 : vector<8x1xf32> to vector<8x128xf32>
    %21 = arith.subf %17, %20 : vector<8x128xf32>
    %22 = math.exp %21 : vector<8x128xf32>
    %cst_13 = arith.constant dense<0.000000e+00> : vector<8xf32>
    %23 = vector.multi_reduction <add>, %22, %cst_13 [1] : vector<8x128xf32> to vector<8xf32>
    %24 = vector.shape_cast %23 : vector<8xf32> to vector<8x1xf32>
    %25 = math.log %24 : vector<8x1xf32>
    %26 = vector.broadcast %25 : vector<8x1xf32> to vector<8x128xf32>
    %27 = arith.subf %21, %26 : vector<8x128xf32>
    %c0_14 = arith.constant 0 : index
    %c0_15 = arith.constant 0 : index
    %28 = vector.load %arg6[%c0_14, %c0_15] : memref<8x128xf32, #tpu.memory_space<vmem>>, vector<8x128xf32>
    tpu.vector_store %arg6[%c0_14, %c0_15], %27 {strides = array<i32>} : memref<8x128xf32, #tpu.memory_space<vmem>>, vector<8x128xf32>,
    return
  }
  func.func @transform_0(%arg0: i32) -> (i32, i32) {
    %c0_i32 = arith.constant 0 : i32
    %c0_i32_0 = arith.constant 0 : i32
    return %arg0, %c0_i32 : i32, i32
  }
  func.func @transform_1(%arg0: i32) -> (i32, i32) {
    %c0_i32 = arith.constant 0 : i32
    %c0_i32_0 = arith.constant 0 : i32
    %c0_i32_1 = arith.constant 0 : i32
    return %c0_i32, %c0_i32_0 : i32, i32
  }
  func.func @transform_2(%arg0: i32) -> (i32, i32) {
    %c0_i32 = arith.constant 0 : i32
    %c0_i32_0 = arith.constant 0 : i32
    %c0_i32_1 = arith.constant 0 : i32
    return %c0_i32, %c0_i32_0 : i32, i32
  }
  func.func @transform_3(%arg0: i32) -> (i32, i32) {
    %c0_i32 = arith.constant 0 : i32
    %c0_i32_0 = arith.constant 0 : i32
    %c0_i32_1 = arith.constant 0 : i32
    return %c0_i32, %c0_i32_0 : i32, i32
  }
  func.func @transform_4(%arg0: i32) -> (i32, i32) {
    %c0_i32 = arith.constant 0 : i32
    %c0_i32_0 = arith.constant 0 : i32
    %c0_i32_1 = arith.constant 0 : i32
    return %c0_i32, %c0_i32_0 : i32, i32
  }
  func.func @transform_5(%arg0: i32) -> (i32, i32) {
    %c0_i32 = arith.constant 0 : i32
    %c0_i32_0 = arith.constant 0 : i32
    return %arg0, %c0_i32 : i32, i32
  }
}

</mosaic_0001>

<bundles_post_ra>
// kernel: nn1hidden_forward.1
= control target key start
LH: loop header
LB: loop body
LE: loop exit
PB: predicated region body
PF: predicated region fallthrough
CT: control target
= control target key end

     0   :  { %s367_s0 = inlined_call_operand.vmem [shape: f32[8,256], index: 0, kind: input, shape index: {}]   ;;  %s368_s1 = inlined_call_operand.vmem [shape: f32[256,64], index: 1, kind: input, shape index: {}]   ;;  %s369_s2 = inlined_call_operand.vmem [shape: f32[1,64], index: 2, kind: input, shape index: {}]   ;;  %s370_s3 = inlined_call_operand.vmem [shape: f32[64,128], index: 3, kind: input, shape index: {}]   ;;  %s371_s4 = inlined_call_operand.vmem [shape: f32[1,128], index: 4, kind: input, shape index: {}]   ;;  %s372_s5 = inlined_call_operand.hbm [shape: f32[8,128], index: 5, kind: output, shape index: {}]  }
   0x1   :  { %v38_v0 = vld [vmem:[%s368_s1 + $0x78] sm:$0xff]  ;;  %v37_v1 = vld [vmem:[%s368_s1 + $0x70] sm:$0xff]  ;;  %v36_v4 = vld [vmem:[%s368_s1 + $0x68] sm:$0xff] }
   0x2   :  { %v54_v2 = vld [vmem:[%s368_s1 + $0xf8] sm:$0xff]  ;;  %59 = vmatpush.msra.mxu0 %v38_v0  ;;  %v53_v3 = vld [vmem:[%s368_s1 + $0xf0] sm:$0xff]  ;;  %v52_v5 = vld [vmem:[%s368_s1 + $0xe8] sm:$0xff] }
   0x3   :  { %79 = vmatpush.msra.mxu1 %v54_v2  ;;  %v35_v6 = vld [vmem:[%s368_s1 + $0x60] sm:$0xff]  ;;  %v34_v8 = vld [vmem:[%s368_s1 + $0x58] sm:$0xff]  ;;  %v33_v10 = vld [vmem:[%s368_s1 + $0x50] sm:$0xff] }
   0x4   :  { %60 = vmatpush.msra.mxu0 %v37_v1  ;;  %v51_v7 = vld [vmem:[%s368_s1 + $0xe0] sm:$0xff]  ;;  %v50_v9 = vld [vmem:[%s368_s1 + $0xd8] sm:$0xff]  ;;  %v49_v11 = vld [vmem:[%s368_s1 + $0xd0] sm:$0xff] }
   0x5   :  { %80 = vmatpush.msra.mxu1 %v53_v3  ;;  %v32_v12 = vld [vmem:[%s368_s1 + $0x48] sm:$0xff]  ;;  %v107_v14 = vld [vmem:[%s370_s3 + $0x38] sm:$0xff]  ;;  %v106_v15 = vld [vmem:[%s370_s3 + $0x30] sm:$0xff] }
   0x6   :  { %61 = vmatpush.msra.mxu0 %v36_v4  ;;  %v48_v13 = vld [vmem:[%s368_s1 + $0xc8] sm:$0xff]  ;;  %v31_v16 = vld [vmem:[%s368_s1 + $0x40] sm:$0xff]  ;;  %124 = vmatpush.msra.mxu2 %v107_v14 }
   0x7   :  { %81 = vmatpush.msra.mxu1 %v52_v5  ;;  %v47_v17 = vld [vmem:[%s368_s1 + $0xc0] sm:$0xff]  ;;  %v105_v18 = vld [vmem:[%s370_s3 + $0x28] sm:$0xff] }
   0x8   :  { %62 = vmatpush.msra.mxu0 %v35_v6 }
   0x9   :  { %82 = vmatpush.msra.mxu1 %v51_v7 }
   0xa   :  { %63 = vmatpush.msra.mxu0 %v34_v8 }
   0xb   :  { %83 = vmatpush.msra.mxu1 %v50_v9 }
   0xc   :  { %64 = vmatpush.msra.mxu0 %v33_v10 }
   0xd   :  { %84 = vmatpush.msra.mxu1 %v49_v11 }
   0xe   :  { %65 = vmatpush.msra.mxu0 %v32_v12 }
   0xf   :  { %85 = vmatpush.msra.mxu1 %v48_v13 }
  0x10   :  { %10 = vsyncpa [#allocation3], 0  ;;  %v30_v19 = vld [vmem:[%s368_s1 + $0x38] sm:$0xff]  ;;  %125 = vmatpush.msra.mxu2 %v106_v15  ;;  %66 = vmatpush.msra.mxu0 %v31_v16  ;;  %v104_v21 = vld [vmem:[%s370_s3 + $0x20] sm:$0xff]  ;;  %vm112_vm0 = vcmask 523264   ;;  %v136_v48 = vlaneseq }
  0x11   :  { %v46_v20 = vld [vmem:[%s368_s1 + $0xb8] sm:$0xff]  ;;  %86 = vmatpush.msra.mxu1 %v47_v17  ;;  %v29_v22 = vld [vmem:[%s368_s1 + $0x30] sm:$0xff]  ;;  %v28_v24 = vld [vmem:[%s368_s1 + $0x28] sm:$0xff] }
  0x12   :  { %v45_v23 = vld [vmem:[%s368_s1 + $0xb0] sm:$0xff]  ;;  %126 = vmatpush.msra.mxu2 %v105_v18  ;;  %67 = vmatpush.msra.mxu0 %v30_v19  ;;  %v44_v25 = vld [vmem:[%s368_s1 + $0xa8] sm:$0xff]  ;;  %v27_v26 = vld [vmem:[%s368_s1 + $0x20] sm:$0xff]  ;;  %v137_v49 = vand.u32 127, %v136_v48 }
  0x13   :  { %87 = vmatpush.msra.mxu1 %v46_v20  ;;  %v43_v27 = vld [vmem:[%s368_s1 + $0xa0] sm:$0xff]  ;;  %v26_v28 = vld [vmem:[%s368_s1 + $0x18] sm:$0xff]  ;;  %v25_v30 = vld [vmem:[%s368_s1 + $0x10] sm:$0xff] }
  0x14   :  { %127 = vmatpush.msra.mxu2 %v104_v21  ;;  %68 = vmatpush.msra.mxu0 %v29_v22  ;;  %v42_v29 = vld [vmem:[%s368_s1 + $0x98] sm:$0xff]  ;;  %v41_v31 = vld [vmem:[%s368_s1 + $0x90] sm:$0xff]  ;;  %v24_v32 = vld [vmem:[%s368_s1 + $0x8] sm:$0xff]  ;;  %vm138_vm1 = vcmp.lt.s32.totalorder %v137_v49, 10 }
  0x15   :  { %88 = vmatpush.msra.mxu1 %v45_v23  ;;  %v40_v33 = vld [vmem:[%s368_s1 + $0x88] sm:$0xff]  ;;  %v23_v34 = vld [vmem:[%s368_s1] sm:$0xff]  ;;  %v103_v38 = vld [vmem:[%s370_s3 + $0x18] sm:$0xff] }
  0x16   :  { %69 = vmatpush.msra.mxu0 %v28_v24  ;;  %v39_v35 = vld [vmem:[%s368_s1 + $0x80] sm:$0xff]  ;;  %v22_v37 = vld [vmem:[%s367_s0 + $0x8] sm:$0xff]  ;;  %128 = vmatpush.msra.mxu2 %v103_v38  ;;  %v102_v39 = vld [vmem:[%s370_s3 + $0x10] sm:$0xff] }
  0x17   :  { %89 = vmatpush.msra.mxu1 %v44_v25  ;;  %v21_v36 = vld [vmem:[%s367_s0] sm:$0xff]  ;;  %v101_v40 = vld [vmem:[%s370_s3 + $0x8] sm:$0xff] }
  0x18   :  { %70 = vmatpush.msra.mxu0 %v27_v26  ;;  %129 = vmatpush.msra.mxu2 %v102_v39  ;;  %v100_v41 = vld [vmem:[%s370_s3] sm:$0xff] }
  0x19   :  { %90 = vmatpush.msra.mxu1 %v43_v27  ;;  %v169_v42 = vld [vmem:[%s369_s2] ss:$0 sm:$0xff]  ;;  %s201_s2 = smov [#allocation2]  }
  0x1a   :  { %71 = vmatpush.msra.mxu0 %v26_v28  ;;  %130 = vmatpush.msra.mxu2 %v101_v40  ;;  %v170_v50 = vld [vmem:[%s371_s4] ss:$0 sm:$0xff]  ;;  %s156_s3 = sshll.u32 %s201_s2, 4  ;;  %s158_s4 = sshll.u32 %s372_s5, 4  ;;  %s157_s3 = int_to_ptr.vmem [resolvable:$true] %s156_s3  ;;  %s159_s4 = int_to_ptr.hbm [resolvable:$true] %s158_s4 }
  0x1b   :  { %91 = vmatpush.msra.mxu1 %v42_v29 }
  0x1c   :  { %72 = vmatpush.msra.mxu0 %v25_v30  ;;  %131 = vmatpush.msra.mxu2 %v100_v41 }
  0x1d   :  { %92 = vmatpush.msra.mxu1 %v41_v31 }
  0x1e   :  { %73 = vmatpush.msra.mxu0 %v24_v32 }
  0x1f   :  { %93 = vmatpush.msra.mxu1 %v40_v33 }
  0x20   :  { %74 = vmatpush.msra.mxu0 %v23_v34 }
  0x21   :  { %94 = vmatpush.msra.mxu1 %v39_v35  ;;  %75 = vmatmul.f32.vlgmr.msra.gmra.mxu0 %v21_v36 }
  0x22   :  { %95 = vmatmul.f32.vlgmr.msra.gmra.mxu1 %v22_v37 }
  0x9e   :  { %v76_v43 = vpop.f32.mrf.mxu0 }
  0x9f   :  { %v96_v44 = vpop.f32.mrf.mxu1  ;;  %v77_v45 = vadd.f32 %v169_v42, %v76_v43 }
  0xa1   :  { %v97_v46 = vadd.f32 %v96_v44, %v77_v45 }
  0xa3   :  { %v99_v47 = vmax.f32 %v97_v46, 0.0 }
  0xa5   :  { %167 = vmatmul.msk.f32.vlgmr.msra.gmra.mxu2 %vm112_vm0, %v99_v47 }
 0x128   :  { %v133_v51 = vpop.f32.mrf.mxu2 }
 0x129   :  { %v134_v52 = vadd.f32 %v170_v50, %v133_v51 }
 0x12b   :  { %v139_v53 = vsel %vm138_vm1, %v134_v52, -1e+30 }
 0x12c   :  { %140 = vmax.xlane.f32.xlu0 %v139_v53 }
 0x19f   :  { %v141_v54 = vpop.xlane.xlu0 %140 }
 0x1a0   :  { %v142_v55 = vsub.f32 %v139_v53, %v141_v54 }
 0x1a2   :  { %v143_v56 = vmul.f32 1.442695, %v142_v55 }
 0x1a4   :  { %171 = vpow2.f32 %v143_v56 }
 0x1aa   :  { %v172_v57 = vpop.eup %171 }
 0x1ab   :  { %145 = vadd.xlane.f32.xlu0 %v172_v57 }
 0x21e   :  { %v146_v58 = vpop.xlane.xlu0 %145 }
 0x21f   :  { %173 = vlog2.f32 %v146_v58 }
 0x225   :  { %v174_v59 = vpop.eup %173 }
 0x226   :  { %v148_v60 = vmul.f32 0.6931472, %v174_v59 }
 0x228   :  { %v149_v61 = vsub.f32 %v142_v55, %v148_v60 }
 0x22a   :  { %150 = vst [vmem:[#allocation2] sm:$0xff] %v149_v61 }
 0x22b   :  { %161 = dma.vmem_to_hbm [thread:$0]  %s157_s3, 128, %s159_s4, [#allocation3]  }
 0x22c   :  { %199 = dma.done.wait [#allocation3], 128  }
 0x22d   :  { %200 = vsyncadd [#allocation3], 4294967168 }
 0x22e   :  { %166 = vsyncpa [#allocation3], 1 }

</bundles_post_ra>
